<compile_context>
chip_gen: v5e
topology: v5e:2x2
jax: 0.10.0
libtpu: 0.0.40
codegen_flags: <defaults>
</compile_context>

<pallas_src>
import functools

import jax
import jax.numpy as jnp
from jax.experimental import pallas as pl
from jax.experimental.pallas import tpu as pltpu


def mlp_kernel(x_ref, w_in_ref, b_in_ref, w_h_ref, b_h_ref, w_out_ref, b_out_ref,
               o_ref, *, compute_dtype=jnp.float32):
    # x_ref:     (1, TB)
    # w_in_ref:  (H, 1)        b_in_ref: (H, 1)
    # w_h_ref:   (L-1, H, H)   b_h_ref:  (L-1, H, 1)
    # w_out_ref: (1, H)        b_out_ref:(1, 1)
    # o_ref:     (1, TB)
    x = x_ref[...]  # (1, TB), lane dense

    # Input layer Linear(1, H): K=1 matmul is a degenerate outer product, so do
    # it as a VPU broadcast multiply-add that pipelines with the tanh (EUP).
    h = jnp.tanh(w_in_ref[...] * x + b_in_ref[...]).astype(compute_dtype)  # (H, TB)

    # Hidden layers, statically unrolled (L-1 is small). Column layout means
    # the PyTorch (out, in) weight is used directly: h_new = W @ h + b.
    # compute_dtype=bf16 casts matmul operands and tanh input (v6e/v7x lever:
    # EUP tanh is the binding unit); accumulation stays f32 via
    # preferred_element_type. f32 default makes every astype a no-op.
    for i in range(w_h_ref.shape[0]):
        z = jnp.dot(
            w_h_ref[i].astype(compute_dtype), h,
            preferred_element_type=jnp.float32,
        ) + b_h_ref[i]
        h = jnp.tanh(z.astype(compute_dtype)).astype(compute_dtype)

    # Output layer Linear(H, 1): (1, H) @ (H, TB) -> lane-dense (1, TB).
    out = jnp.dot(
        w_out_ref[...].astype(compute_dtype), h,
        preferred_element_type=jnp.float32,
    ) + b_out_ref[...]
    o_ref[...] = out.astype(o_ref.dtype)


def _choose_tiling(N, *, cap=16384):
    """Pick (padded_N, tile_b) with tile_b % 128 == 0 and padded_N % tile_b == 0.

    - Large tiles (cap ~16K lanes) amortize the ~0.35us per-grid-step overhead.
    - At least 2 (even) grid steps whenever possible so v7x's two TensorCores
      both receive work through the ("parallel",) grid axis.
    """
    cap = max(128, (cap // 128) * 128)
    padded = ((N + 127) // 128) * 128          # lane-multiple batch
    max_steps = padded // 128
    if max_steps == 1:
        return padded, padded                  # tiny batch: single 128-lane step
    steps = max(2, -(-padded // cap))          # ceil-div; >= 2 steps for megacore
    if steps % 2:
        steps += 1                             # even step count balances 2 TCs
    steps = min(steps, max_steps)
    if steps % 2 and steps > 2:
        steps -= 1
    tile_b = 128 * (-(-padded // (128 * steps)))
    return tile_b * steps, tile_b


def net_forward(x, params, *, tile_b=None, compute_dtype=jnp.float32):
    """x: (N,) float32 -> (N,) float32, matching Net.forward."""
    w_in, b_in, w_h, b_h, w_out, b_out = params
    N = x.shape[0]
    H = w_in.shape[0]
    L1 = w_h.shape[0]

    if tile_b is None:
        Np, tile_b = _choose_tiling(N)
    else:
        tile_b = max(128, (tile_b // 128) * 128)
        Np = tile_b * (-(-N // tile_b))
    assert tile_b % 128 == 0 and Np % tile_b == 0

    if Np != N:
        x = jnp.pad(x, (0, Np - N))            # zero-pad; padded lanes are discarded
    x2 = x.reshape(1, Np)                      # batch on lanes (unsqueeze+transpose; free)

    kernel = functools.partial(mlp_kernel, compute_dtype=compute_dtype)

    out = pl.pallas_call(
        kernel,
        out_shape=jax.ShapeDtypeStruct((1, Np), jnp.float32),
        grid_spec=pltpu.PrefetchScalarGridSpec(
            num_scalar_prefetch=0,
            grid=(Np // tile_b,),
            in_specs=[
                pl.BlockSpec((1, tile_b), lambda i: (0, i)),    # x tile (lane dense)
                # Weights/biases are grid-invariant (constant index_map). At
                # H=32 their double-buffering costs only a few KiB of VMEM, so
                # keep the simple specs; revisit only if H / layer count grow.
                pl.BlockSpec((H, 1), lambda i: (0, 0)),         # W_in  (out, in)
                pl.BlockSpec((H, 1), lambda i: (0, 0)),         # b_in  as column
                pl.BlockSpec((L1, H, H), lambda i: (0, 0, 0)),  # hidden W stack
                pl.BlockSpec((L1, H, 1), lambda i: (0, 0, 0)),  # hidden b stack
                pl.BlockSpec((1, H), lambda i: (0, 0)),         # W_out (out, in)
                pl.BlockSpec((1, 1), lambda i: (0, 0)),         # b_out
            ],
            out_specs=pl.BlockSpec((1, tile_b), lambda i: (0, i)),
        ),
        compiler_params=pltpu.CompilerParams(
            dimension_semantics=("parallel",),
            # Within v7x's 64 MiB physical / equal to its default; lifts v5e's
            # 16 MiB default scoped limit so 16K-lane tiles fit comfortably.
            vmem_limit_bytes=32 * 1024 * 1024,
        ),
    )(x2, w_in, b_in, w_h, b_h, w_out, b_out)

    return out.reshape(Np)[:N]                 # torch.squeeze(out, 1) (+ drop padding)


def init_params(key, num_hidden_units, num_hidden_layers, inputs=1, outputs=1):
    """Deterministic parameter init (PyTorch-style uniform fan-in scaling).

    Weights are stored in PyTorch-native (out_features, in_features) shape,
    which is exactly what the transposed (batch-on-lanes) kernel consumes.
    Biases are stored as columns (out_features, 1).
    """
    assert inputs == 1 and outputs == 1, "Net spec in nn_test1D.py uses 1-D in/out"
    assert num_hidden_layers >= 2, "need at least one hidden HxH layer"
    H, L = num_hidden_units, num_hidden_layers
    ks = jax.random.split(key, 6)

    def u(k, shape, fan_in):
        bound = 1.0 / jnp.sqrt(fan_in)
        return jax.random.uniform(k, shape, jnp.float32, -bound, bound)

    w_in = u(ks[0], (H, inputs), inputs)        # (H, 1)  == input_layer.weight
    b_in = u(ks[1], (H, 1), inputs)             # (H, 1)  == input_layer.bias[:, None]
    w_h = u(ks[2], (L - 1, H, H), H)            # stacked hidden weights (out, in)
    b_h = u(ks[3], (L - 1, H, 1), H)            # stacked hidden biases as columns
    w_out = u(ks[4], (outputs, H), H)           # (1, H)  == output_layer.weight
    b_out = u(ks[5], (outputs, 1), H)           # (1, 1)
    return (w_in, b_in, w_h, b_h, w_out, b_out)


def net_forward_ref(x, params):
    """Pure-JAX reference mirroring the PyTorch forward (row layout)."""
    w_in, b_in, w_h, b_h, w_out, b_out = params
    out = x.reshape(-1, 1)                                   # unsqueeze(1)
    out = jnp.tanh(out @ w_in.T + b_in.reshape(1, -1))       # input_layer + tanh
    for i in range(w_h.shape[0]):
        out = jnp.tanh(out @ w_h[i].T + b_h[i].reshape(1, -1))
    out = out @ w_out.T + b_out.reshape(1, -1)               # output_layer
    return out.reshape(-1)                                   # squeeze(1)


if __name__ == "__main__":
    key = jax.random.PRNGKey(0)
    k_param, k_x, k_x2 = jax.random.split(key, 3)

    num_hidden_units = 32
    num_hidden_layers = 3   # -> 2 hidden HxH layers
    inputs, outputs = 1, 1

    params = init_params(k_param, num_hidden_units, num_hidden_layers, inputs, outputs)

    # Main check: lane-multiple batch -> 2 lane-dense grid steps of 128.
    N = 256
    x = jax.random.uniform(k_x, (N,), jnp.float32, -1.0, 1.0)
    y = jax.block_until_ready(net_forward(x, params))
    y_ref = net_forward_ref(x, params)
    assert y.shape == (N,)
    assert jnp.allclose(y, y_ref, atol=1e-5, rtol=1e-5)

    # Robustness check: batch not a multiple of 128 (zero-padded internally).
    N2 = 200
    xb = jax.random.uniform(k_x2, (N2,), jnp.float32, -1.0, 1.0)
    yb = jax.block_until_ready(net_forward(xb, params))
    yb_ref = net_forward_ref(xb, params)
    assert yb.shape == (N2,)
    assert jnp.allclose(yb, yb_ref, atol=1e-5, rtol=1e-5)

    # Optional bf16 compute path (the v6e/v7x EUP/VPU lever); loose tolerance.
    y_bf16 = jax.block_until_ready(
        net_forward(x, params, compute_dtype=jnp.bfloat16))
    assert y_bf16.shape == (N,)
    assert jnp.allclose(y_bf16, y_ref, atol=6e-2)

    print("KERNEL_OK")
</pallas_src>

<mosaic_0001>
module attributes {stable_mosaic.version = 11 : i64} {
  func.func @mlp_kernel(%arg0: i32, %arg1: memref<1x128xf32, #tpu.memory_space<vmem>>, %arg2: memref<32x1xf32, #tpu.memory_space<vmem>>, %arg3: memref<32x1xf32, #tpu.memory_space<vmem>>, %arg4: memref<2x32x32xf32, #tpu.memory_space<vmem>>, %arg5: memref<2x32x1xf32, #tpu.memory_space<vmem>>, %arg6: memref<1x32xf32, #tpu.memory_space<vmem>>, %arg7: memref<1x1xf32, #tpu.memory_space<vmem>>, %arg8: memref<1x128xf32, #tpu.memory_space<vmem>>) attributes {dimension_semantics = [#tpu.dimension_semantics<parallel>], iteration_bounds = array<i64: 2>, scalar_prefetch = 0 : i64, scratch_operands = 0 : i64, tpu.core_type = #tpu.core_type<tc>, window_params = [{transform_indices = @transform_0, window_bounds = array<i64: 1, 128>}, {pipeline_mode = #tpu.pipeline_mode<synchronous>, transform_indices = @transform_1, window_bounds = array<i64: 32, 1>}, {pipeline_mode = #tpu.pipeline_mode<synchronous>, transform_indices = @transform_2, window_bounds = array<i64: 32, 1>}, {pipeline_mode = #tpu.pipeline_mode<synchronous>, transform_indices = @transform_3, window_bounds = array<i64: 2, 32, 32>}, {pipeline_mode = #tpu.pipeline_mode<synchronous>, transform_indices = @transform_4, window_bounds = array<i64: 2, 32, 1>}, {pipeline_mode = #tpu.pipeline_mode<synchronous>, transform_indices = @transform_5, window_bounds = array<i64: 1, 32>}, {pipeline_mode = #tpu.pipeline_mode<synchronous>, transform_indices = @transform_6, window_bounds = array<i64: 1, 1>}, {transform_indices = @transform_7, window_bounds = array<i64: 1, 128>}]} {
    %c0 = arith.constant 0 : index
    %c0_0 = arith.constant 0 : index
    %0 = vector.load %arg1[%c0, %c0_0] : memref<1x128xf32, #tpu.memory_space<vmem>>, vector<1x128xf32>
    %c0_1 = arith.constant 0 : index
    %c0_2 = arith.constant 0 : index
    %1 = vector.load %arg2[%c0_1, %c0_2] : memref<32x1xf32, #tpu.memory_space<vmem>>, vector<32x1xf32>
    %2 = vector.broadcast %1 : vector<32x1xf32> to vector<32x128xf32>
    %3 = vector.broadcast %0 : vector<1x128xf32> to vector<32x128xf32>
    %4 = arith.mulf %2, %3 : vector<32x128xf32>
    %c0_3 = arith.constant 0 : index
    %c0_4 = arith.constant 0 : index
    %5 = vector.load %arg3[%c0_3, %c0_4] : memref<32x1xf32, #tpu.memory_space<vmem>>, vector<32x1xf32>
    %6 = vector.broadcast %5 : vector<32x1xf32> to vector<32x128xf32>
    %7 = arith.addf %4, %6 : vector<32x128xf32>
    %8 = math.tanh %7 : vector<32x128xf32>
    %c0_5 = arith.constant 0 : index
    %c0_6 = arith.constant 0 : index
    %c0_7 = arith.constant 0 : index
    %9 = vector.load %arg4[%c0_5, %c0_6, %c0_7] : memref<2x32x32xf32, #tpu.memory_space<vmem>>, vector<1x32x32xf32>
    %10 = vector.shape_cast %9 : vector<1x32x32xf32> to vector<32x32xf32>
    %cst = arith.constant dense<0.000000e+00> : vector<32x128xf32>
    %11 = tpu.matmul %10, %8, %cst {dimension_numbers = #tpu.dot_dimension_numbers<[1], [0], [0], [1], [0, 0, 1, 1], [], []>} : vector<32x32xf32>, vector<32x128xf32>, vector<32x128xf32> -> vector<32x128xf32>
    %c0_8 = arith.constant 0 : index
    %c0_9 = arith.constant 0 : index
    %c0_10 = arith.constant 0 : index
    %12 = vector.load %arg5[%c0_8, %c0_9, %c0_10] : memref<2x32x1xf32, #tpu.memory_space<vmem>>, vector<1x32x1xf32>
    %13 = vector.shape_cast %12 : vector<1x32x1xf32> to vector<32x1xf32>
    %14 = vector.broadcast %13 : vector<32x1xf32> to vector<32x128xf32>
    %15 = arith.addf %11, %14 : vector<32x128xf32>
    %16 = math.tanh %15 : vector<32x128xf32>
    %c1 = arith.constant 1 : index
    %c0_11 = arith.constant 0 : index
    %c0_12 = arith.constant 0 : index
    %17 = vector.load %arg4[%c1, %c0_11, %c0_12] : memref<2x32x32xf32, #tpu.memory_space<vmem>>, vector<1x32x32xf32>
    %18 = vector.shape_cast %17 : vector<1x32x32xf32> to vector<32x32xf32>
    %cst_13 = arith.constant dense<0.000000e+00> : vector<32x128xf32>
    %19 = tpu.matmul %18, %16, %cst_13 {dimension_numbers = #tpu.dot_dimension_numbers<[1], [0], [0], [1], [0, 0, 1, 1], [], []>} : vector<32x32xf32>, vector<32x128xf32>, vector<32x128xf32> -> vector<32x128xf32>
    %c1_14 = arith.constant 1 : index
    %c0_15 = arith.constant 0 : index
    %c0_16 = arith.constant 0 : index
    %20 = vector.load %arg5[%c1_14, %c0_15, %c0_16] : memref<2x32x1xf32, #tpu.memory_space<vmem>>, vector<1x32x1xf32>
    %21 = vector.shape_cast %20 : vector<1x32x1xf32> to vector<32x1xf32>
    %22 = vector.broadcast %21 : vector<32x1xf32> to vector<32x128xf32>
    %23 = arith.addf %19, %22 : vector<32x128xf32>
    %24 = math.tanh %23 : vector<32x128xf32>
    %c0_17 = arith.constant 0 : index
    %c0_18 = arith.constant 0 : index
    %25 = vector.load %arg6[%c0_17, %c0_18] : memref<1x32xf32, #tpu.memory_space<vmem>>, vector<1x32xf32>
    %cst_19 = arith.constant dense<0.000000e+00> : vector<1x128xf32>
    %26 = tpu.matmul %25, %24, %cst_19 {dimension_numbers = #tpu.dot_dimension_numbers<[1], [0], [0], [1], [0, 0, 1, 1], [], []>} : vector<1x32xf32>, vector<32x128xf32>, vector<1x128xf32> -> vector<1x128xf32>
    %c0_20 = arith.constant 0 : index
    %c0_21 = arith.constant 0 : index
    %27 = vector.load %arg7[%c0_20, %c0_21] : memref<1x1xf32, #tpu.memory_space<vmem>>, vector<1x1xf32>
    %28 = vector.broadcast %27 : vector<1x1xf32> to vector<1x128xf32>
    %29 = arith.addf %26, %28 : vector<1x128xf32>
    %c0_22 = arith.constant 0 : index
    %c0_23 = arith.constant 0 : index
    %30 = vector.load %arg8[%c0_22, %c0_23] : memref<1x128xf32, #tpu.memory_space<vmem>>, vector<1x128xf32>
    tpu.vector_store %arg8[%c0_22, %c0_23], %29 {strides = array<i32>} : memref<1x128xf32, #tpu.memory_space<vmem>>, vector<1x128xf32>,
    return
  }
  func.func @transform_0(%arg0: i32) -> (i32, i32) {
    %c0_i32 = arith.constant 0 : i32
    %c0_i32_0 = arith.constant 0 : i32
    return %c0_i32, %arg0 : i32, i32
  }
  func.func @transform_1(%arg0: i32) -> (i32, i32) {
    %c0_i32 = arith.constant 0 : i32
    %c0_i32_0 = arith.constant 0 : i32
    %c0_i32_1 = arith.constant 0 : i32
    return %c0_i32, %c0_i32_0 : i32, i32
  }
  func.func @transform_2(%arg0: i32) -> (i32, i32) {
    %c0_i32 = arith.constant 0 : i32
    %c0_i32_0 = arith.constant 0 : i32
    %c0_i32_1 = arith.constant 0 : i32
    return %c0_i32, %c0_i32_0 : i32, i32
  }
  func.func @transform_3(%arg0: i32) -> (i32, i32, i32) {
    %c0_i32 = arith.constant 0 : i32
    %c0_i32_0 = arith.constant 0 : i32
    %c0_i32_1 = arith.constant 0 : i32
    %c0_i32_2 = arith.constant 0 : i32
    return %c0_i32, %c0_i32_0, %c0_i32_1 : i32, i32, i32
  }
  func.func @transform_4(%arg0: i32) -> (i32, i32, i32) {
    %c0_i32 = arith.constant 0 : i32
    %c0_i32_0 = arith.constant 0 : i32
    %c0_i32_1 = arith.constant 0 : i32
    %c0_i32_2 = arith.constant 0 : i32
    return %c0_i32, %c0_i32_0, %c0_i32_1 : i32, i32, i32
  }
  func.func @transform_5(%arg0: i32) -> (i32, i32) {
    %c0_i32 = arith.constant 0 : i32
    %c0_i32_0 = arith.constant 0 : i32
    %c0_i32_1 = arith.constant 0 : i32
    return %c0_i32, %c0_i32_0 : i32, i32
  }
  func.func @transform_6(%arg0: i32) -> (i32, i32) {
    %c0_i32 = arith.constant 0 : i32
    %c0_i32_0 = arith.constant 0 : i32
    %c0_i32_1 = arith.constant 0 : i32
    return %c0_i32, %c0_i32_0 : i32, i32
  }
  func.func @transform_7(%arg0: i32) -> (i32, i32) {
    %c0_i32 = arith.constant 0 : i32
    %c0_i32_0 = arith.constant 0 : i32
    return %c0_i32, %arg0 : i32, i32
  }
}

</mosaic_0001>

<bundles_post_ra>
// kernel: tpu_custom_call.1
= control target key start
LH: loop header
LB: loop body
LE: loop exit
PB: predicated region body
PF: predicated region fallthrough
CT: control target
= control target key end

     0   :  { %s961_s0 = inlined_call_operand.vmem [shape: f32[1,256], index: 0, kind: input, shape index: {}]   ;;  %s962_s1 = inlined_call_operand.vmem [shape: f32[32,1], index: 1, kind: input, shape index: {}]   ;;  %s963_s2 = inlined_call_operand.vmem [shape: f32[32,1], index: 2, kind: input, shape index: {}]   ;;  %s964_s3 = inlined_call_operand.vmem [shape: f32[2,32,32], index: 3, kind: input, shape index: {}]   ;;  %s965_s4 = inlined_call_operand.vmem [shape: f32[2,32,1], index: 4, kind: input, shape index: {}]   ;;  %s966_s5 = inlined_call_operand.vmem [shape: f32[1,32], index: 5, kind: input, shape index: {}]   ;;  %s967_s6 = inlined_call_operand.<no memory space> [shape: f32[1,1], index: 6, kind: input, shape index: {}]   ;;  %s968_s7 = inlined_call_operand.hbm [shape: f32[1,256], index: 7, kind: output, shape index: {}]  }
   0x1   :  { %v12_v0 = vstv %s967_s6 }
   0x2   :  { %13 = vst [vmem:[#allocation2] sm:$0x1] %v12_v0 }
   0x3   :  { %14 = vsyncpa [#allocation4], 0 }
   0x4   :  { %16 = vsyncpa [#allocation4 + $0x1], 0  ;;  %s789_s26 = smov 0   ;;  %s791_s27 = smov 0  }
   0x5   :  { %s793_s28 = smov 0   ;;  %s795_s29 = smov 0  }
   0x6 LB: > { %s810_s6 = sadd.s32 4294967295, %s743_s29   ;;  %s582_s30 = sadd.s32 4294967294, %s743_s29   ;;  %s743_s29 = sphi %s795_s29, %s974_s29   ;;  %s739_s28 = sphi %s793_s28, %s973_s28   ;;  %s735_s27 = sphi %s791_s27, %s972_s27   ;;  %s731_s26 = sphi %s789_s26, %s971_s26  }
   0x7   : > { %s814_s8 = sadd.s32 1, %s743_s29   ;;  %s181_s9 = sadd.s32 1, %s739_s28 }
   0x8   : > { %s178_s10 = ssub.s32 %s743_s29, %s814_s8  ;;  %p191_p0 = scmp.ne.s32.totalorder %s739_s28, %s735_s27 }
   0x9   : > { %p179_p1 = scmp.eq.s32.totalorder %s178_s10, 0  ;;  %p192_p2 = scmp.eq.s32.totalorder %s810_s6, 1 }
   0xa   : > { %p197_p3 = scmp.ne.s32.totalorder %s735_s27, %s731_s26  ;;  %p198_p4 = scmp.eq.s32.totalorder %s582_s30, 1 }
   0xb   : > { %s825_s11 = scalar_select %p179_p1, %s739_s28, %s181_s9  }
   0xc   : > { %p827_p5 = por %p192_p2, %p191_p0  ;;  %p831_p6 = por %p198_p4, %p197_p3 }
   0xd   : > { %p585_p7 = scmp.ge.s32.totalorder %s743_s29, 1  ;;  %p240_p8 = scmp.lt.s32.totalorder %s743_s29, 3 }
   0xf   : > { %p241_p9 = pnand %p585_p7, %p240_p8 }
  0x10   : > { %p269_p10 = scmp.lt.s32.totalorder (!%p241_p9), %s810_s6, 1  ;;  %s267_s24 = sand.u32 (!%p241_p9), 1, %s735_s27  }
  0x11   : > { %244 = sbr.rel (%p241_p9) target bundleno = 627 (0x273), region = 48  ;;  %s526_s9 = scalar_lea.hbm (!%p241_p9), %s968_s7, %s810_s6 }
  0x12   : > { %s268_s10 = scalar_lea.vmem (!%p241_p9), [#allocation3], %s267_s24  ;;  %s530_s15 = sshll.u32 (!%p241_p9), %s526_s9, 4  ;;  %s531_s15 = int_to_ptr.hbm [resolvable:$true] %s530_s15 }
  0x13   : > { %s528_s14 = sshll.u32 (!%p241_p9), %s268_s10, 4  ;;  %s518_s16 = scalar_lea.sflag (!%p241_p9), [#allocation4], %s267_s24  ;;  %s529_s14 = int_to_ptr.vmem [resolvable:$true] %s528_s14 }
  0x14   : > { %s695_s17 = sshra.s32 (!%p241_p9), %s531_s15, 4  ;;  %s696_s17 = int_to_ptr.hbm [resolvable:$true] %s695_s17 }
  0x15   : > { %s697_s18 = scalar_lea.hbm (!%p241_p9), %s696_s17, 1  ;;  %p702_p0 = scmp.lt.s32.totalorder (!%p241_p9), %s696_s17, %s968_s7 }
  0x16   : > { %v306_v1 = vld [vmem:[%s963_s2 + $0x10] sm:$0xff]  ;;  %v307_v2 = vld [vmem:[%s963_s2 + $0x18] sm:$0xff]  ;;  %v745_v4 = vmov 0   ;;  %s848_s20 = scalar_select %p269_p10, %s810_s6, 1  ;;  %v273_v5 = vld [vmem:[%s962_s1] sm:$0xff]  ;;  %vm364_vm0 = vcmask 261120  }
  0x17   : > { %v276_v3 = vld [vmem:[%s962_s1 + $0x18] sm:$0xff]  ;;  %655 = vset.pattern.permute.xlu2 %v745_v4  ;;  %654 = vset.pattern.permute.xlu1 %v745_v4  ;;  %v275_v6 = vld [vmem:[%s962_s1 + $0x10] sm:$0xff]  ;;  %v274_v7 = vld [vmem:[%s962_s1 + $0x8] sm:$0xff]  ;;  %p698_p11 = scmp.ne.s32.totalorder %s696_s17, %s697_s18 }
  0x18   : > { %653 = vset.pattern.permute.xlu0 %v745_v4  ;;  %320 = vperm.xlu2 %655, %v306_v1   ;;  %s271_s23 = scalar_lea.vmem %s961_s0, %s848_s20  ;;  %v343_v8 = vld [vmem:[%s965_s4 + $0x18] sm:$0xff]  ;;  %v305_v9 = vld [vmem:[%s963_s2 + $0x8] sm:$0xff]  ;;  %v304_v10 = vld [vmem:[%s963_s2] sm:$0xff]  ;;  %s701_s20 = scalar_lea.hbm %s968_s7, 2 }
  0x19   : > { %325 = vperm.xlu1 %654, %v307_v2   ;;  %294 = vperm.xlu0 %653, %v276_v3   ;;  %v340_v11 = vld [vmem:[%s965_s4] sm:$0xff]  ;;  %v342_v12 = vld [vmem:[%s965_s4 + $0x10] sm:$0xff]  ;;  %v341_v13 = vld [vmem:[%s965_s4 + $0x8] sm:$0xff]  ;;  %p699_p12 = pnand %p698_p11, %p827_p5  ;;  %p703_p1 = scmp.lt.s32.totalorder %s701_s20, %s697_s18 }
  0x1a   : > { %v595_v14 = vld [vmem:[%s965_s4 + $0x28] sm:$0xff]  ;;  %v597_v15 = vld [vmem:[%s965_s4 + $0x38] sm:$0xff]  ;;  %v596_v16 = vld [vmem:[%s965_s4 + $0x30] sm:$0xff] }
  0x1b   : > { %v594_v17 = vld [vmem:[%s965_s4 + $0x20] sm:$0xff]  ;;  %v337_v40 = vld [vmem:[%s964_s3 + $0x8] sm:$0xff]  ;;  %v338_v42 = vld [vmem:[%s964_s3 + $0x10] sm:$0xff]  ;;  %p700_p13 = pneg %p699_p12  ;;  %p704_p2 = por %p703_p1, %p702_p0 }
  0x1c   : > { %v486_v18 = vld [vmem:[#allocation2] sm:$0x1]  ;;  %v339_v43 = vld [vmem:[%s964_s3 + $0x18] sm:$0xff]  ;;  %v591_v60 = vld [vmem:[%s964_s3 + $0x28] sm:$0xff] }
  0x1d   : > { %v656_v19 = vld [vmem:[%s271_s23] ss:$0 sm:$0xff]  ;;  %v592_v62 = vld [vmem:[%s964_s3 + $0x30] sm:$0xff]  ;;  %v593_v63 = vld [vmem:[%s964_s3 + $0x38] sm:$0xff]  ;;  %p705_p3 = pnand %p704_p2, %p700_p13 }
  0x1e   : > { %v336_v39 = vld [vmem:[%s964_s3] sm:$0xff] }
  0x1f   : > { %v590_v59 = vld [vmem:[%s964_s3 + $0x20] sm:$0xff] }
  0x20   : > { %279 = vperm.xlu2 %655, %v273_v5  }
  0x21   : > { %289 = vperm.xlu0 %653, %v275_v6   ;;  %284 = vperm.xlu1 %654, %v274_v7  }
  0x28   : > { %361 = vperm.xlu2 %655, %v343_v8  }
  0x29   : > { %315 = vperm.xlu0 %653, %v305_v9   ;;  %310 = vperm.xlu1 %654, %v304_v10  }
  0x30   : > { %346 = vperm.xlu2 %655, %v340_v11  }
  0x31   : > { %356 = vperm.xlu0 %653, %v342_v12   ;;  %351 = vperm.xlu1 %654, %v341_v13  }
  0x38   : > { %427 = vperm.xlu2 %655, %v595_v14  }
  0x39   : > { %437 = vperm.xlu0 %653, %v597_v15   ;;  %432 = vperm.xlu1 %654, %v596_v16   ;;  %v485_v15 = vld [vmem:[%s966_s5] sm:$0x1] }
  0x41   : > { %422 = vperm.xlu0 %653, %v594_v17   ;;  %489 = vperm.xlu1 %654, %v486_v18  }
  0x72   : > { %v321_v24 = vpop.permute.xlu2 %320 }
  0x7a   : > { %v280_v30 = vpop.permute.xlu2 %279 }
  0x7b   : > { %v300_v31 = vmul.f32 %v656_v19, %v280_v30 }
  0x82   : > { %v362_v46 = vpop.permute.xlu2 %361 }
  0x8a   : > { %v347_v54 = vpop.permute.xlu2 %346 }
  0x8b   : > { %v326_v20 = vpop.permute.xlu1 %325  ;;  %v295_v21 = vpop.permute.xlu0 %294 }
  0x8c   : > { %v303_v22 = vmul.f32 %v656_v19, %v295_v21 }
  0x8e   : > { %v331_v23 = vadd.f32 %v326_v20, %v303_v22 }
  0x90   : > { %657 = vtanh.f32 %v331_v23 }
  0x92   : > { %v428_v7 = vpop.permute.xlu2 %427 }
  0x93   : > { %v290_v25 = vpop.permute.xlu0 %289  ;;  %v285_v26 = vpop.permute.xlu1 %284 }
  0x94   : > { %v302_v27 = vmul.f32 %v656_v19, %v290_v25  ;;  %v301_v32 = vmul.f32 %v656_v19, %v285_v26 }
  0x96   : > { %v658_v28 = vpop.eup %657  ;;  %v330_v29 = vadd.f32 %v321_v24, %v302_v27 }
  0x97   : > { %389 = vmatpush.msra.mxu0 %v658_v28  ;;  %605 = vmatpush.msra.mxu3 %v658_v28 }
  0x98   : > { %659 = vtanh.f32 %v330_v29 }
  0x9b   : > { %v316_v33 = vpop.permute.xlu0 %315  ;;  %v311_v34 = vpop.permute.xlu1 %310 }
  0x9c   : > { %v329_v35 = vadd.f32 %v316_v33, %v301_v32  ;;  %v328_v36 = vadd.f32 %v311_v34, %v300_v31 }
  0x9e   : > { %v660_v37 = vpop.eup %659  ;;  %661 = vtanh.f32 %v329_v35 }
  0x9f   : > { %390 = vmatpush.msra.mxu0 %v660_v37  ;;  %606 = vmatpush.msra.mxu3 %v660_v37  ;;  %663 = vtanh.f32 %v328_v36 }
  0xa3   : > { %v357_v47 = vpop.permute.xlu0 %356  ;;  %v352_v51 = vpop.permute.xlu1 %351 }
  0xa4   : > { %v662_v38 = vpop.eup %661 }
  0xa5   : > { %391 = vmatpush.msra.mxu0 %v662_v38  ;;  %607 = vmatpush.msra.mxu3 %v662_v38  ;;  %v664_v41 = vpop.eup %663 }
  0xa7   : > { %392 = vmatpush.msra.mxu0 %v664_v41  ;;  %608 = vmatpush.msra.mxu3 %v664_v41 }
  0xa8   : > { %586 = vmatmul.msk.f32.vlgmr.msra.gmra.mxu0 %vm364_vm0, %v336_v39  ;;  %587 = vmatmul.msk.f32.vlgmr.msra.gmra.mxu3 %vm364_vm0, %v337_v40 }
  0xab   : > { %v438_v2 = vpop.permute.xlu0 %437  ;;  %v433_v3 = vpop.permute.xlu1 %432 }
  0xb0   : > { %588 = vmatmul.msk.f32.gmra.mxu3 %vm364_vm0, %v338_v42 }
  0xb3   : > { %v423_v10 = vpop.permute.xlu0 %422  ;;  %v490_v17 = vpop.permute.xlu1 %489 }
  0xb4   : > { %v492_v18 = vperm.slane %v490_v17, 0 }
  0xb8   : > { %589 = vmatmul.msk.f32.gmra.mxu3 %vm364_vm0, %v339_v43 }
 0x125   : > { %v394_v52 = vpop.f32.mrf.mxu0 }
 0x126   : > { %v395_v55 = vadd.f32 %v394_v52, %v347_v54 }
 0x12b   : > { %v397_v44 = vpop.f32.mrf.mxu3 }
 0x12c   : > { %v398_v53 = vadd.f32 %v397_v44, %v352_v51 }
 0x133   : > { %v400_v45 = vpop.f32.mrf.mxu3 }
 0x134   : > { %v401_v49 = vadd.f32 %v400_v45, %v357_v47 }
 0x13b   : > { %v403_v48 = vpop.f32.mrf.mxu3 }
 0x13c   : > { %v404_v50 = vadd.f32 %v403_v48, %v362_v46 }
 0x13e   : > { %665 = vtanh.f32 %v404_v50 }
 0x13f   : > { %667 = vtanh.f32 %v401_v49 }
 0x140   : > { %669 = vtanh.f32 %v398_v53 }
 0x141   : > { %671 = vtanh.f32 %v395_v55 }
 0x144   : > { %v666_v56 = vpop.eup %665 }
 0x145   : > { %464 = vmatpush.msrb.mxu0 %v666_v56  ;;  %609 = vmatpush.msra.mxu1 %v666_v56  ;;  %v668_v57 = vpop.eup %667 }
 0x146   : > { %v670_v58 = vpop.eup %669 }
 0x147   : > { %465 = vmatpush.msrb.mxu0 %v668_v57  ;;  %610 = vmatpush.msra.mxu1 %v668_v57  ;;  %v672_v61 = vpop.eup %671 }
 0x149   : > { %466 = vmatpush.msrb.mxu0 %v670_v58  ;;  %611 = vmatpush.msra.mxu1 %v670_v58 }
 0x14b   : > { %467 = vmatpush.msrb.mxu0 %v672_v61  ;;  %612 = vmatpush.msra.mxu1 %v672_v61 }
 0x14c   : > { %598 = vmatmul.msk.f32.vlgmr.msrb.gmra.mxu0 %vm364_vm0, %v590_v59  ;;  %599 = vmatmul.msk.f32.vlgmr.msra.gmra.mxu1 %vm364_vm0, %v591_v60 }
 0x154   : > { %600 = vmatmul.msk.f32.gmra.mxu1 %vm364_vm0, %v592_v62 }
 0x15c   : > { %601 = vmatmul.msk.f32.gmra.mxu1 %vm364_vm0, %v593_v63 }
 0x1c9   : > { %v472_v0 = vpop.f32.mrf.mxu1  ;;  %v469_v8 = vpop.f32.mrf.mxu0 }
 0x1ca   : > { %v473_v9 = vadd.f32 %v472_v0, %v428_v7  ;;  %v470_v11 = vadd.f32 %v469_v8, %v423_v10 }
 0x1d1   : > { %v475_v1 = vpop.f32.mrf.mxu1 }
 0x1d2   : > { %v476_v5 = vadd.f32 %v475_v1, %v433_v3 }
 0x1d9   : > { %v478_v4 = vpop.f32.mrf.mxu1 }
 0x1da   : > { %v479_v6 = vadd.f32 %v478_v4, %v438_v2 }
 0x1dc   : > { %673 = vtanh.f32 %v479_v6 }
 0x1dd   : > { %675 = vtanh.f32 %v476_v5 }
 0x1de   : > { %677 = vtanh.f32 %v473_v9 }
 0x1df   : > { %679 = vtanh.f32 %v470_v11 }
 0x1e2   : > { %v674_v12 = vpop.eup %673 }
 0x1e3   : > { %508 = vmatpush.msra.mxu2 %v674_v12  ;;  %v676_v13 = vpop.eup %675 }
 0x1e4   : > { %v678_v14 = vpop.eup %677 }
 0x1e5   : > { %509 = vmatpush.msra.mxu2 %v676_v13  ;;  %v680_v16 = vpop.eup %679 }
 0x1e7   : > { %510 = vmatpush.msra.mxu2 %v678_v14 }
 0x1e9   : > { %511 = vmatpush.msra.mxu2 %v680_v16 }
 0x1ea   : > { %602 = vmatmul.msk.f32.vlgmr.msra.gmra.mxu2 %vm364_vm0, %v485_v15 }
 0x26d   : > { %v513_v19 = vpop.f32.mrf.mxu2 }
 0x26e   : > { %v514_v20 = vadd.f32 %v513_v19, %v492_v18 }
 0x270   : > { %516 = vst [vmem:[%s268_s10] sm:$0x1] %v514_v20 }
 0x271   : > { %708 = shalt.err (!%p705_p3)
}
 0x272   : > { %613 = dma.vmem_to_hbm [thread:$0]  (%p827_p5), %s529_s14, 16, %s531_s15, %s518_s16  }
 0x273 PF: > { %p619_p4 = scmp.ge.s32.totalorder %s743_s29, 2  ;;  %s542_s22 = sand.u32 1, %s731_s26  }
 0x274   : > { %s543_s24 = scalar_lea.sflag [#allocation4], %s542_s22 }
 0x275   : > { %p616_p7 = pnand %p619_p4, %p831_p6 }
 0x277   : > { %p617_p8 = pneg %p616_p7 }
 0x279   : > { %726 = dma.done.wait (%p617_p8), %s543_s24, 16  }
 0x27a   : > { %728 = vsyncadd (%p617_p8), %s543_s24, 4294967280  ;;  %p19_p9 = scmp.ge.s32.totalorder %s814_s8, 4   ;;  %s971_s26 = smov %s735_s27 }
 0x27b   : > { %s972_s27 = smov %s739_s28  ;;  %s973_s28 = smov %s825_s11 }
 0x27c   : > { %s974_s29 = smov %s814_s8  ;;  %21 = sbr.rel (!%p19_p9) target bundleno = 6 (0x6), region = 85 }
 0x281   :  { %548 = vsyncpa [#allocation4], 1 }
 0x282   :  { %550 = vsyncpa [#allocation4 + $0x1], 1 }

</bundles_post_ra>
